<compile_context>
chip_gen: v7x
topology: tpu7x:2x2x1
jax: 0.10.0
libtpu: 0.0.40
codegen_flags: <defaults>
</compile_context>

<pallas_src>
import functools

import jax
import jax.numpy as jnp
from jax.experimental import pallas as pl
from jax.experimental.pallas import tpu as pltpu


def _encoder_kernel(t_ref, p_ref, out_ref, sim_ref, *, num_units):
    t = t_ref[...]                                     # (TB, E, 1) f32
    nz = t != 0.0
    mask = nz.astype(jnp.float32)                      # (TB, E, 1) in {0,1}
    t_safe = jnp.where(nz, t, 1.0)                     # avoid inf at t == 0
    t_norm = jnp.tanh(jnp.where(nz, 1.0 / t_safe, 0.0))

    p = p_ref[...]                                     # (6, U) packed params
    wq_f, wk_f, wv_f, wvr_f = p[0], p[1], p[2], p[3]   # folded (U,) rows
    gamma, beta = p[4], p[5]

    # Folded projections: relu(row_scalar * folded_row) * mask  (pure VPU).
    def proj(a, w):                                    # a: (TB,E,1), w: (U,)
        return jnp.maximum(a * w, 0.0) * mask          # (TB, E, U)

    q = proj(t_norm, wq_f)
    k = proj(t_norm, wk_f)
    v = proj(t, wv_f)
    v_res = proj(t, wvr_f)

    scale = 1.0 / (float(num_units) ** 0.5)
    s = jnp.einsum("beu,bfu->bef", q, k,
                   preferred_element_type=jnp.float32) * scale  # (TB, E, E)
    sim_ref[...] = s                                   # pre-softmax scores out

    # softmax over the key axis (denominator reciprocal on the EUP).
    m = jnp.max(s, axis=-1, keepdims=True)
    e = jnp.exp(s - m)
    attn = e * pl.reciprocal(jnp.sum(e, axis=-1, keepdims=True), approx=True)

    out = jnp.einsum("bef,bfu->beu", attn, v,
                     preferred_element_type=jnp.float32)         # (TB, E, U)
    out = jnp.maximum(out + v_res, 0.0)                # residual (dropout=id) + ReLU

    # InstanceNorm1d math: per-(b, e) normalization over the U axis.
    mu = jnp.mean(out, axis=-1, keepdims=True)
    var = jnp.mean(jnp.square(out - mu), axis=-1, keepdims=True)
    normed = (out - mu) * jax.lax.rsqrt(var + 1e-5)
    out_ref[...] = gamma * normed + beta               # (TB, E, U)


def _pick_batch_chunk(B, E, U, budget_bytes=8 << 20):
    """Largest batch-chunk dividing B whose f32 working set fits the budget."""
    # rough per-batch footprint: q,k,v,v_res,out,normed,... ~10*E*U, scores ~3*E*E
    per_b = 4 * (10 * E * U + 3 * E * E + 4 * E)
    tb = max(1, min(B, budget_bytes // max(per_b, 1)))
    if B >= 4:
        # leave >=2 chunks so the "parallel" grid axis can shard across v7x cores
        tb = min(tb, B // 2)
    while B % tb:                                      # largest divisor of B <= tb
        tb -= 1
    return tb


def transformer_encoder(time_diff, params):
    """time_diff: [B, E, 1] float32. Returns (outputs [B,E,U], sim [B,E,E])."""
    B, E, _ = time_diff.shape
    U = params["w_q"].shape[1]

    # --- algebraic fold of Linear(1,U) -> Linear(U,U) chains (exact) --------
    wq_f = params["w_time_inv"] @ params["w_q"]        # (1, U)
    wk_f = params["w_time_inv"] @ params["w_k"]        # (1, U)
    wv_f = params["w_time"] @ params["w_v"]            # (1, U)
    wvr_f = params["w_time"] @ params["w_v_res"]       # (1, U)
    packed = jnp.concatenate(
        [wq_f, wk_f, wv_f, wvr_f,
         params["gamma"].reshape(1, U), params["beta"].reshape(1, U)],
        axis=0).astype(jnp.float32)                    # (6, U)

    tb = _pick_batch_chunk(B, E, U)
    num_chunks = B // tb

    kernel = functools.partial(_encoder_kernel, num_units=U)

    out, sim = pl.pallas_call(
        kernel,
        grid=(num_chunks,),
        in_specs=[
            pl.BlockSpec((tb, E, 1), lambda c: (c, 0, 0)),   # time_diff chunk
            pl.BlockSpec((6, U), lambda c: (0, 0)),          # packed params
        ],
        out_specs=(
            pl.BlockSpec((tb, E, U), lambda c: (c, 0, 0)),   # outputs block
            pl.BlockSpec((tb, E, E), lambda c: (c, 0, 0)),   # scores block
        ),
        out_shape=(
            jax.ShapeDtypeStruct((B, E, U), jnp.float32),
            jax.ShapeDtypeStruct((B, E, E), jnp.float32),
        ),
        compiler_params=pltpu.CompilerParams(
            dimension_semantics=("parallel",)),
    )(time_diff, packed)

    return out, sim


def _reference(time_diff, params):
    """Pure-JAX reference mirroring the PyTorch forward (eval mode, unfused)."""
    U = params["w_q"].shape[1]
    mask = jnp.sign(jnp.abs(time_diff))                     # [B,E,1]
    t_inv = jnp.where(mask == 0, mask, 1.0 / time_diff)
    t_norm = jnp.tanh(t_inv)
    lin = t_norm * params["w_time_inv"][None]               # [B,E,U]
    value = time_diff * params["w_time"][None]              # [B,E,U]

    def lrm(x, w):
        return jnp.maximum(jnp.einsum("beu,uo->beo", x, w), 0.0) * mask

    q = lrm(lin, params["w_q"])
    k = lrm(lin, params["w_k"])
    v = lrm(value, params["w_v"])
    v_res = lrm(value, params["w_v_res"])
    s = jnp.einsum("beu,bfu->bef", q, k) / (U ** 0.5)
    w = jax.nn.softmax(s, axis=-1)
    out = jnp.einsum("bef,bfu->beu", w, v) + v_res
    out = jnp.maximum(out, 0.0)
    mu = jnp.mean(out, axis=-1, keepdims=True)
    var = jnp.mean((out - mu) ** 2, axis=-1, keepdims=True)
    normed = (out - mu) / jnp.sqrt(var + 1e-5)
    out = params["gamma"] * normed + params["beta"]
    return out, s


if __name__ == "__main__":
    B, E, U = 2, 8, 32            # batch, edge_num, num_units (= feature_input_shape)

    key = jax.random.PRNGKey(0)
    keys = jax.random.split(key, 8)

    # Deterministic parameter init (synthetic; no checkpoint loading).
    # Weights stored as [in_features, out_features] (transposed vs torch Linear.weight).
    params = {
        "w_time_inv": jax.random.normal(keys[0], (1, U), jnp.float32) * 0.1,
        "w_time":     jax.random.normal(keys[1], (1, U), jnp.float32) * 0.1,
        "w_q":        jax.random.normal(keys[2], (U, U), jnp.float32) * 0.1,
        "w_k":        jax.random.normal(keys[3], (U, U), jnp.float32) * 0.1,
        "w_v":        jax.random.normal(keys[4], (U, U), jnp.float32) * 0.1,
        "w_v_res":    jax.random.normal(keys[5], (U, U), jnp.float32) * 0.1,
        "gamma":      jnp.ones((1, U), jnp.float32),
        "beta":       jnp.zeros((1, U), jnp.float32),
    }

    time_diff = jax.random.normal(keys[6], (B, E, 1), jnp.float32)
    # introduce a few exact zeros to exercise the mask path
    zero_mask = (jax.random.uniform(keys[7], (B, E, 1)) < 0.25)
    time_diff = jnp.where(zero_mask, 0.0, time_diff)

    out, sim = transformer_encoder(time_diff, params)
    out, sim = jax.block_until_ready((out, sim))

    ref_out, ref_sim = _reference(time_diff, params)
    # sim is computed exactly (pre-softmax); out uses the EUP approximate
    # reciprocal for the softmax denominator, so it gets a slightly looser bar.
    assert jnp.allclose(sim, ref_sim, atol=1e-4, rtol=1e-4), "similarity mismatch"
    assert jnp.allclose(out, ref_out, atol=2e-3, rtol=2e-3), "output mismatch"

    print("KERNEL_OK")
</pallas_src>

<mosaic_0001>
module attributes {stable_mosaic.version = 11 : i64} {
  func.func @_encoder_kernel(%arg0: i32, %arg1: memref<2x8x1xf32, #tpu.memory_space<vmem>>, %arg2: memref<6x32xf32, #tpu.memory_space<vmem>>, %arg3: memref<2x8x32xf32, #tpu.memory_space<vmem>>, %arg4: memref<2x8x8xf32, #tpu.memory_space<vmem>>) attributes {dimension_semantics = [#tpu.dimension_semantics<parallel>], iteration_bounds = array<i64: 1>, scalar_prefetch = 0 : i64, scratch_operands = 0 : i64, tpu.core_type = #tpu.core_type<tc>, window_params = [{transform_indices = @transform_0, window_bounds = array<i64: 2, 8, 1>}, {pipeline_mode = #tpu.pipeline_mode<synchronous>, transform_indices = @transform_1, window_bounds = array<i64: 6, 32>}, {transform_indices = @transform_2, window_bounds = array<i64: 2, 8, 32>}, {transform_indices = @transform_3, window_bounds = array<i64: 2, 8, 8>}]} {
    %c0 = arith.constant 0 : index
    %c0_0 = arith.constant 0 : index
    %c0_1 = arith.constant 0 : index
    %0 = vector.load %arg1[%c0, %c0_0, %c0_1] : memref<2x8x1xf32, #tpu.memory_space<vmem>>, vector<2x8x1xf32>
    %cst = arith.constant 0.000000e+00 : f32
    %1 = vector.broadcast %cst : f32 to vector<2x8x1xf32>
    %2 = arith.cmpf one, %0, %1 : vector<2x8x1xf32>
    %3 = arith.extui %2 : vector<2x8x1xi1> to vector<2x8x1xi32>
    %4 = arith.sitofp %3 : vector<2x8x1xi32> to vector<2x8x1xf32>
    %cst_2 = arith.constant 1.000000e+00 : f32
    %5 = vector.broadcast %cst_2 : f32 to vector<2x8x1xf32>
    %6 = arith.select %2, %0, %5 : vector<2x8x1xi1>, vector<2x8x1xf32>
    %cst_3 = arith.constant 1.000000e+00 : f32
    %7 = vector.broadcast %cst_3 : f32 to vector<2x8x1xf32>
    %8 = arith.divf %7, %6 : vector<2x8x1xf32>
    %cst_4 = arith.constant 0.000000e+00 : f32
    %9 = vector.broadcast %cst_4 : f32 to vector<2x8x1xf32>
    %10 = arith.select %2, %8, %9 : vector<2x8x1xi1>, vector<2x8x1xf32>
    %11 = math.tanh %10 : vector<2x8x1xf32>
    %c0_5 = arith.constant 0 : index
    %c0_6 = arith.constant 0 : index
    %12 = vector.load %arg2[%c0_5, %c0_6] : memref<6x32xf32, #tpu.memory_space<vmem>>, vector<6x32xf32>
    %13 = vector.extract_strided_slice %12 {offsets = [0, 0], sizes = [1, 32], strides = [1, 1]} : vector<6x32xf32> to vector<1x32xf32>
    %14 = vector.shape_cast %13 : vector<1x32xf32> to vector<32xf32>
    %15 = vector.extract_strided_slice %12 {offsets = [1, 0], sizes = [1, 32], strides = [1, 1]} : vector<6x32xf32> to vector<1x32xf32>
    %16 = vector.shape_cast %15 : vector<1x32xf32> to vector<32xf32>
    %17 = vector.extract_strided_slice %12 {offsets = [2, 0], sizes = [1, 32], strides = [1, 1]} : vector<6x32xf32> to vector<1x32xf32>
    %18 = vector.shape_cast %17 : vector<1x32xf32> to vector<32xf32>
    %19 = vector.extract_strided_slice %12 {offsets = [3, 0], sizes = [1, 32], strides = [1, 1]} : vector<6x32xf32> to vector<1x32xf32>
    %20 = vector.shape_cast %19 : vector<1x32xf32> to vector<32xf32>
    %21 = vector.extract_strided_slice %12 {offsets = [4, 0], sizes = [1, 32], strides = [1, 1]} : vector<6x32xf32> to vector<1x32xf32>
    %22 = vector.shape_cast %21 : vector<1x32xf32> to vector<32xf32>
    %23 = vector.extract_strided_slice %12 {offsets = [5, 0], sizes = [1, 32], strides = [1, 1]} : vector<6x32xf32> to vector<1x32xf32>
    %24 = vector.shape_cast %23 : vector<1x32xf32> to vector<32xf32>
    %25 = vector.shape_cast %14 : vector<32xf32> to vector<1x1x32xf32>
    %26 = vector.broadcast %11 : vector<2x8x1xf32> to vector<2x8x32xf32>
    %27 = vector.broadcast %25 : vector<1x1x32xf32> to vector<2x8x32xf32>
    %28 = arith.mulf %26, %27 : vector<2x8x32xf32>
    %cst_7 = arith.constant 0.000000e+00 : f32
    %29 = vector.broadcast %cst_7 : f32 to vector<2x8x32xf32>
    %30 = arith.maximumf %28, %29 : vector<2x8x32xf32>
    %31 = vector.broadcast %4 : vector<2x8x1xf32> to vector<2x8x32xf32>
    %32 = arith.mulf %30, %31 : vector<2x8x32xf32>
    %33 = vector.shape_cast %16 : vector<32xf32> to vector<1x1x32xf32>
    %34 = vector.broadcast %11 : vector<2x8x1xf32> to vector<2x8x32xf32>
    %35 = vector.broadcast %33 : vector<1x1x32xf32> to vector<2x8x32xf32>
    %36 = arith.mulf %34, %35 : vector<2x8x32xf32>
    %cst_8 = arith.constant 0.000000e+00 : f32
    %37 = vector.broadcast %cst_8 : f32 to vector<2x8x32xf32>
    %38 = arith.maximumf %36, %37 : vector<2x8x32xf32>
    %39 = vector.broadcast %4 : vector<2x8x1xf32> to vector<2x8x32xf32>
    %40 = arith.mulf %38, %39 : vector<2x8x32xf32>
    %41 = vector.shape_cast %18 : vector<32xf32> to vector<1x1x32xf32>
    %42 = vector.broadcast %0 : vector<2x8x1xf32> to vector<2x8x32xf32>
    %43 = vector.broadcast %41 : vector<1x1x32xf32> to vector<2x8x32xf32>
    %44 = arith.mulf %42, %43 : vector<2x8x32xf32>
    %cst_9 = arith.constant 0.000000e+00 : f32
    %45 = vector.broadcast %cst_9 : f32 to vector<2x8x32xf32>
    %46 = arith.maximumf %44, %45 : vector<2x8x32xf32>
    %47 = vector.broadcast %4 : vector<2x8x1xf32> to vector<2x8x32xf32>
    %48 = arith.mulf %46, %47 : vector<2x8x32xf32>
    %49 = vector.shape_cast %20 : vector<32xf32> to vector<1x1x32xf32>
    %50 = vector.broadcast %0 : vector<2x8x1xf32> to vector<2x8x32xf32>
    %51 = vector.broadcast %49 : vector<1x1x32xf32> to vector<2x8x32xf32>
    %52 = arith.mulf %50, %51 : vector<2x8x32xf32>
    %cst_10 = arith.constant 0.000000e+00 : f32
    %53 = vector.broadcast %cst_10 : f32 to vector<2x8x32xf32>
    %54 = arith.maximumf %52, %53 : vector<2x8x32xf32>
    %55 = vector.broadcast %4 : vector<2x8x1xf32> to vector<2x8x32xf32>
    %56 = arith.mulf %54, %55 : vector<2x8x32xf32>
    "tpu.trace_start"() <{level = 10 : i32, message = "beu,bfu->bef"}> : () -> ()
    %cst_11 = arith.constant dense<0.000000e+00> : vector<2x8x8xf32>
    %57 = tpu.matmul %32, %40, %cst_11 {dimension_numbers = #tpu.dot_dimension_numbers<[2], [2], [1], [1], [0, 0, 0, 1, 1, 1], [0], [0]>} : vector<2x8x32xf32>, vector<2x8x32xf32>, vector<2x8x8xf32> -> vector<2x8x8xf32>
    "tpu.trace_stop"() : () -> ()
    %cst_12 = arith.constant 0.176776692 : f32
    %58 = vector.broadcast %cst_12 : f32 to vector<2x8x8xf32>
    %59 = arith.mulf %57, %58 : vector<2x8x8xf32>
    %c0_13 = arith.constant 0 : index
    %c0_14 = arith.constant 0 : index
    %c0_15 = arith.constant 0 : index
    %60 = vector.load %arg4[%c0_13, %c0_14, %c0_15] : memref<2x8x8xf32, #tpu.memory_space<vmem>>, vector<2x8x8xf32>
    tpu.vector_store %arg4[%c0_13, %c0_14, %c0_15], %59 {strides = array<i32>} : memref<2x8x8xf32, #tpu.memory_space<vmem>>, vector<2x8x8xf32>,
    %cst_16 = arith.constant dense<0xFF800000> : vector<2x8xf32>
    %61 = vector.multi_reduction <maximumf>, %59, %cst_16 [2] : vector<2x8x8xf32> to vector<2x8xf32>
    %62 = vector.shape_cast %61 : vector<2x8xf32> to vector<2x8x1xf32>
    %63 = vector.broadcast %62 : vector<2x8x1xf32> to vector<2x8x8xf32>
    %64 = arith.subf %59, %63 : vector<2x8x8xf32>
    %65 = math.exp %64 : vector<2x8x8xf32>
    %cst_17 = arith.constant dense<0.000000e+00> : vector<2x8xf32>
    %66 = vector.multi_reduction <add>, %65, %cst_17 [2] : vector<2x8x8xf32> to vector<2x8xf32>
    %67 = vector.shape_cast %66 : vector<2x8xf32> to vector<2x8x1xf32>
    %68 = tpu.reciprocal %67 {approx = true} : vector<2x8x1xf32> -> vector<2x8x1xf32>
    %69 = vector.broadcast %68 : vector<2x8x1xf32> to vector<2x8x8xf32>
    %70 = arith.mulf %65, %69 : vector<2x8x8xf32>
    "tpu.trace_start"() <{level = 10 : i32, message = "bef,bfu->beu"}> : () -> ()
    %cst_18 = arith.constant dense<0.000000e+00> : vector<2x8x32xf32>
    %71 = tpu.matmul %70, %48, %cst_18 {dimension_numbers = #tpu.dot_dimension_numbers<[2], [1], [1], [2], [0, 0, 0, 1, 1, 2], [0], [0]>} : vector<2x8x8xf32>, vector<2x8x32xf32>, vector<2x8x32xf32> -> vector<2x8x32xf32>
    "tpu.trace_stop"() : () -> ()
    %72 = arith.addf %71, %56 : vector<2x8x32xf32>
    %cst_19 = arith.constant 0.000000e+00 : f32
    %73 = vector.broadcast %cst_19 : f32 to vector<2x8x32xf32>
    %74 = arith.maximumf %72, %73 : vector<2x8x32xf32>
    %cst_20 = arith.constant dense<0.000000e+00> : vector<2x8xf32>
    %75 = vector.multi_reduction <add>, %74, %cst_20 [2] : vector<2x8x32xf32> to vector<2x8xf32>
    %76 = vector.shape_cast %75 : vector<2x8xf32> to vector<2x8x1xf32>
    %cst_21 = arith.constant 3.200000e+01 : f32
    %77 = vector.broadcast %cst_21 : f32 to vector<2x8x1xf32>
    %78 = arith.divf %76, %77 : vector<2x8x1xf32>
    %79 = vector.broadcast %78 : vector<2x8x1xf32> to vector<2x8x32xf32>
    %80 = arith.subf %74, %79 : vector<2x8x32xf32>
    %81 = arith.mulf %80, %80 : vector<2x8x32xf32>
    %cst_22 = arith.constant dense<0.000000e+00> : vector<2x8xf32>
    %82 = vector.multi_reduction <add>, %81, %cst_22 [2] : vector<2x8x32xf32> to vector<2x8xf32>
    %83 = vector.shape_cast %82 : vector<2x8xf32> to vector<2x8x1xf32>
    %cst_23 = arith.constant 3.200000e+01 : f32
    %84 = vector.broadcast %cst_23 : f32 to vector<2x8x1xf32>
    %85 = arith.divf %83, %84 : vector<2x8x1xf32>
    %86 = vector.broadcast %78 : vector<2x8x1xf32> to vector<2x8x32xf32>
    %87 = arith.subf %74, %86 : vector<2x8x32xf32>
    %cst_24 = arith.constant 9.99999974E-6 : f32
    %88 = vector.broadcast %cst_24 : f32 to vector<2x8x1xf32>
    %89 = arith.addf %85, %88 : vector<2x8x1xf32>
    %90 = math.rsqrt %89 : vector<2x8x1xf32>
    %91 = vector.broadcast %90 : vector<2x8x1xf32> to vector<2x8x32xf32>
    %92 = arith.mulf %87, %91 : vector<2x8x32xf32>
    %93 = vector.shape_cast %22 : vector<32xf32> to vector<1x1x32xf32>
    %94 = vector.broadcast %93 : vector<1x1x32xf32> to vector<2x8x32xf32>
    %95 = arith.mulf %94, %92 : vector<2x8x32xf32>
    %96 = vector.shape_cast %24 : vector<32xf32> to vector<1x1x32xf32>
    %97 = vector.broadcast %96 : vector<1x1x32xf32> to vector<2x8x32xf32>
    %98 = arith.addf %95, %97 : vector<2x8x32xf32>
    %c0_25 = arith.constant 0 : index
    %c0_26 = arith.constant 0 : index
    %c0_27 = arith.constant 0 : index
    %99 = vector.load %arg3[%c0_25, %c0_26, %c0_27] : memref<2x8x32xf32, #tpu.memory_space<vmem>>, vector<2x8x32xf32>
    tpu.vector_store %arg3[%c0_25, %c0_26, %c0_27], %98 {strides = array<i32>} : memref<2x8x32xf32, #tpu.memory_space<vmem>>, vector<2x8x32xf32>,
    return
  }
  func.func @transform_0(%arg0: i32) -> (i32, i32, i32) {
    %c0_i32 = arith.constant 0 : i32
    %c0_i32_0 = arith.constant 0 : i32
    %c0_i32_1 = arith.constant 0 : i32
    return %arg0, %c0_i32, %c0_i32_0 : i32, i32, i32
  }
  func.func @transform_1(%arg0: i32) -> (i32, i32) {
    %c0_i32 = arith.constant 0 : i32
    %c0_i32_0 = arith.constant 0 : i32
    %c0_i32_1 = arith.constant 0 : i32
    return %c0_i32, %c0_i32_0 : i32, i32
  }
  func.func @transform_2(%arg0: i32) -> (i32, i32, i32) {
    %c0_i32 = arith.constant 0 : i32
    %c0_i32_0 = arith.constant 0 : i32
    %c0_i32_1 = arith.constant 0 : i32
    return %arg0, %c0_i32, %c0_i32_0 : i32, i32, i32
  }
  func.func @transform_3(%arg0: i32) -> (i32, i32, i32) {
    %c0_i32 = arith.constant 0 : i32
    %c0_i32_0 = arith.constant 0 : i32
    %c0_i32_1 = arith.constant 0 : i32
    return %arg0, %c0_i32, %c0_i32_0 : i32, i32, i32
  }
}

</mosaic_0001>

<bundles_post_ra>
// kernel: tpu_custom_call.1
= control target key start
LH: loop header
LB: loop body
LE: loop exit
PB: predicated region body
PF: predicated region fallthrough
CT: control target
= control target key end

     0   :  { %9 = vsyncpa [#allocation3], 0  ;;  %v623_v2 = vmov 0   ;;  %s761_s0 = inlined_call_operand.vmem [shape: f32[2,8,1], index: 0, kind: input, shape index: {}]   ;;  %s762_s1 = inlined_call_operand.vmem [shape: f32[6,32], index: 1, kind: input, shape index: {}]   ;;  %s763_s2 = inlined_call_operand.hbm [shape: f32[2,8,32], index: 2, kind: output, shape index: {0}]   ;;  %s764_s3 = inlined_call_operand.hbm [shape: f32[2,8,8], index: 3, kind: output, shape index: {1}]  }
   0x1   :  { %v653_v0 = vld [vmem:[%s761_s0] sm:$0xff]  ;;  %v658_v1 = vld [vmem:[%s761_s0 + $0x8] sm:$0xff]  ;;  %548 = vset.pattern.permute.xlu0 %v623_v2  ;;  %549 = vset.pattern.permute.xlu1 %v623_v2 }
   0x2   :  { %vm17_vm0 = vcmp.ne.f32.partialorder %v653_v0, 0.0  ;;  %vm18_vm1 = vcmp.ne.f32.partialorder %v658_v1, 0.0 }
   0x3   :  { %10 = vsyncpa [#allocation5], 0  ;;  %v23_v3 = vsel %vm17_vm0, %v653_v0, 1.0  ;;  %v624_v4 = vmov 0.0   ;;  %v24_v7 = vsel %vm18_vm1, %v658_v1, 1.0  ;;  %vm625_vm2 = vmmov 0  }
   0x4   :  { %v505_v5 = vsel %vm17_vm0, 1.0, %v624_v4  ;;  %v506_v6 = vsel %vm18_vm1, 1.0, %v624_v4  ;;  %521 = vmatprep.subr.mxu0 %v624_v4  ;;  %526 = vmatprep.subr.mxu1 %v624_v4  ;;  %555 = vrcp.f32 %v23_v3  ;;  %v44_v15 = vlaneseq  ;;  %v685_v19 = vld [vmem:[%s762_s1] sm:$0x3f]  ;;  %s626_s1 = smov [#allocation4]  }
   0x5   :  { %v550_v8 = vpack.i.bf16 %v506_v6, %v505_v5  ;;  %557 = vrcp.f32 %v24_v7  ;;  %523 = vmatprep.mubr.msk.f32.mxu0 %vm625_vm2, %v624_v4  ;;  %528 = vmatprep.mubr.msk.f32.mxu1 %vm625_vm2, %v624_v4  ;;  %vm104_vm3 = vcmask 261120   ;;  %vm259_vm4 = vcmask 64512   ;;  %s490_s17 = sshll.u32 %s626_s1, 4  ;;  %s491_s17 = int_to_ptr.vmem [resolvable:$true] %s490_s17 }
   0x6   :  { %v678_v16 = vshrl.u32 %v44_v15, 7  ;;  %s575_s18 = scalar_lea.vmem %s491_s17, 256  ;;  %p580_p1 = scmp.lt.s32.totalorder %s491_s17, %s491_s17 }
   0x7   :  { %551 = vperm.xlu1 %549, %v550_v8   ;;  %p576_p0 = scmp.ne.s32.totalorder %s491_s17, %s575_s18  ;;  %p581_p2 = scmp.lt.s32.totalorder %s575_s18, %s575_s18 }
   0x8   :  { %v46_v17 = vsub.s32 0, %v678_v16  ;;  %v66_v18 = vsub.s32 1, %v678_v16  ;;  %v86_v58 = vsub.s32 2, %v678_v16 }
   0x9   :  { %p582_p3 = por %p581_p2, %p580_p1 }
   0xa   :  { %v47_v20 = vrot.slane %v685_v19, %v46_v17  ;;  %v67_v21 = vrot.slane %v685_v19, %v66_v18  ;;  %v87_v60 = vrot.slane %v685_v19, %v86_v58 }
   0xb   :  { %p583_p4 = pnand %p582_p3, %p576_p0 }
   0xe   :  { %v556_v9 = vpop.eup %555 }
   0xf   :  { %v558_v10 = vpop.eup %557  ;;  %v29_v11 = vsel %vm17_vm0, %v556_v9, 0.0  ;;  %v96_v9 = vsub.s32 3, %v678_v16 }
  0x10   :  { %559 = vtanh.f32 %v29_v11  ;;  %v30_v12 = vsel %vm18_vm1, %v558_v10, 0.0 }
  0x11   :  { %561 = vtanh.f32 %v30_v12  ;;  %v97_v10 = vrot.slane %v685_v19, %v96_v9 }
  0x1a   :  { %v560_v13 = vpop.eup %559 }
  0x1b   :  { %36 = vperm.xlu0 %548, %v560_v13   ;;  %v562_v14 = vpop.eup %561 }
  0x1f   :  { %41 = vperm.xlu0 %548, %v562_v14  }
  0x86   :  { %v552_v22 = vpop.permute.xlu1 %551 }
  0x87   :  { %v689_v26 = vunpack.i.l.bf16 %v552_v22  ;;  %v692_v33 = vunpack.i.h.bf16 %v552_v22 }
  0x9a   :  { %v37_v23 = vpop.permute.xlu0 %36 }
  0x9b   :  { %v48_v24 = vmul.f32 %v47_v20, %v37_v23  ;;  %v68_v25 = vmul.f32 %v67_v21, %v37_v23 }
  0x9d   :  { %v70_v27 = vmax.f32 %v68_v25, 0.0  ;;  %v50_v28 = vmax.f32 %v48_v24, 0.0 }
  0x9e   :  { %v42_v29 = vpop.permute.xlu0 %41 }
  0x9f   :  { %v49_v30 = vmul.f32 %v47_v20, %v42_v29  ;;  %v69_v31 = vmul.f32 %v67_v21, %v42_v29  ;;  %v72_v32 = vmul.f32 %v689_v26, %v70_v27  ;;  %v62_v36 = vmul.f32 %v689_v26, %v50_v28 }
  0xa1   :  { %v71_v34 = vmax.f32 %v69_v31, 0.0  ;;  %522 = vmatpush3.xpose.msk.msra.mxu0 %vm104_vm3, %v72_v32  ;;  %v51_v35 = vmax.f32 %v49_v30, 0.0 }
  0xa2   :  { %531 = vmatprep.subr.mxu0 %v624_v4 }
  0xa3   :  { %v73_v37 = vmul.f32 %v692_v33, %v71_v34  ;;  %v63_v38 = vmul.f32 %v692_v33, %v51_v35 }
  0xa4   :  { %524 = vmatmul.mubr.msk.f32.vlgmr.msra.gmra.mrb[0].mxu0 %vm104_vm3, %v62_v36 }
  0xa5   :  { %527 = vmatpush3.xpose.msk.msra.mxu1 %vm104_vm3, %v73_v37  ;;  %533 = vmatprep.mubr.msk.f32.mxu0 %vm625_vm2, %v624_v4 }
  0xa6   :  { %536 = vmatprep.subr.mxu1 %v624_v4 }
  0xa8   :  { %529 = vmatmul.mubr.msk.f32.vlgmr.msra.gmra.mrb[0].mxu1 %vm104_vm3, %v63_v38 }
  0xa9   :  { %538 = vmatprep.mubr.msk.f32.mxu1 %vm625_vm2, %v624_v4 }
 0x177   :  { %v177_v39 = vpop.f32.mrb[0].mxu0 }
 0x178   :  { %v257_v40 = vmul.f32 0.17677669, %v177_v39  ;;  %v525_v41 = vpop.f32.mrb[1].mxu0 }
 0x17a   :  { %260 = vst.msk [vmem:[#allocation4] sm:$0xff] %vm259_vm4, %v257_v40  ;;  %v262_v42 = vsel %vm259_vm4, %v257_v40, -inf }
 0x17b   :  { %v253_v43 = vpop.f32.mrb[0].mxu1  ;;  %263 = vmax.xlane.f32.xlu1 %v262_v42 }
 0x17c   :  { %v258_v44 = vmul.f32 0.17677669, %v253_v43  ;;  %v530_v45 = vpop.f32.mrb[1].mxu1 }
 0x17e   :  { %261 = vst.msk [vmem:[#allocation4 + $0x8] sm:$0xff] %vm259_vm4, %v258_v44  ;;  %v265_v46 = vsel %vm259_vm4, %v258_v44, -inf }
 0x17f   :  { %266 = vmax.xlane.f32.xlu0 %v265_v46 }
 0x208   :  { %v264_v47 = vpop.xlane.xlu1 %263 }
 0x209   :  { %v268_v48 = vsub.f32 %v257_v40, %v264_v47 }
 0x20b   :  { %v270_v49 = vmul.f32 1.442695, %v268_v48 }
 0x20c   :  { %v267_v50 = vpop.xlane.xlu0 %266 }
 0x20d   :  { %563 = vpow2.f32 %v270_v49  ;;  %v269_v51 = vsub.f32 %v258_v44, %v267_v50 }
 0x20f   :  { %v272_v52 = vmul.f32 1.442695, %v269_v51 }
 0x211   :  { %565 = vpow2.f32 %v272_v52 }
 0x217   :  { %v564_v53 = vpop.eup %563 }
 0x218   :  { %v274_v54 = vsel %vm259_vm4, %v564_v53, 0.0 }
 0x219   :  { %275 = vadd.xlane.f32.xlu0 %v274_v54 }
 0x21b   :  { %v566_v55 = vpop.eup %565 }
 0x21c   :  { %v277_v56 = vsel %vm259_vm4, %v566_v55, 0.0 }
 0x21d   :  { %278 = vadd.xlane.f32.xlu1 %v277_v56 }
 0x22e   :  { %81 = vperm.xlu1 %549, %v658_v1  }
 0x22f   :  { %76 = vperm.xlu0 %548, %v653_v0  }
 0x2a6   :  { %v276_v57 = vpop.xlane.xlu0 %275 }
 0x2a7   :  { %567 = vrcp.f32 %v276_v57 }
 0x2aa   :  { %v279_v59 = vpop.xlane.xlu1 %278 }
 0x2ab   :  { %569 = vrcp.f32 %v279_v59 }
 0x2ae   :  { %v77_v61 = vpop.permute.xlu0 %76  ;;  %v82_v62 = vpop.permute.xlu1 %81 }
 0x2af   :  { %v88_v63 = vmul.f32 %v87_v60, %v77_v61  ;;  %v89_v2 = vmul.f32 %v87_v60, %v82_v62  ;;  %v98_v11 = vmul.f32 %v97_v10, %v77_v61  ;;  %v99_v12 = vmul.f32 %v97_v10, %v82_v62 }
 0x2b1   :  { %v568_v3 = vpop.eup %567  ;;  %v90_v4 = vmax.f32 %v88_v63, 0.0  ;;  %v91_v5 = vmax.f32 %v89_v2, 0.0  ;;  %v100_v13 = vmax.f32 %v98_v11, 0.0  ;;  %v101_v14 = vmax.f32 %v99_v12, 0.0 }
 0x2b2   :  { %v282_v0 = vmul.f32 %v568_v3, %v564_v53 }
 0x2b3   :  { %v92_v6 = vmul.f32 %v689_v26, %v90_v4  ;;  %v93_v1 = vmul.f32 %v692_v33, %v91_v5  ;;  %v102_v15 = vmul.f32 %v689_v26, %v100_v13  ;;  %v103_v21 = vmul.f32 %v692_v33, %v101_v14 }
 0x2b5   :  { %v570_v7 = vpop.eup %569  ;;  %532 = vmatpush3.msra.mxu0 %v92_v6  ;;  %537 = vmatpush3.msra.mxu1 %v93_v1 }
 0x2b6   :  { %v283_v8 = vmul.f32 %v570_v7, %v566_v55  ;;  %534 = vmatmul.mubr.msk.f32.vlgmr.msra.gmra.mrb[2].mxu0 %vm259_vm4, %v282_v0 }
 0x2b8   :  { %539 = vmatmul.mubr.msk.f32.vlgmr.msra.gmra.mrb[2].mxu1 %vm259_vm4, %v283_v8 }
 0x389   :  { %v353_v17 = vpop.f32.mrb[2].mxu0 }
 0x38a   :  { %v354_v18 = vadd.f32 %v353_v17, %v102_v15  ;;  %v535_v20 = vpop.f32.mrb[3].mxu0 }
 0x38b   :  { %v426_v22 = vpop.f32.mrb[2].mxu1 }
 0x38c   :  { %v430_v23 = vmax.f32 %v354_v18, 0.0  ;;  %v427_v24 = vadd.f32 %v426_v22, %v103_v21  ;;  %v540_v25 = vpop.f32.mrb[3].mxu1 }
 0x38e   :  { %v431_v27 = vmax.f32 %v427_v24, 0.0  ;;  %v432_v28 = vsel %vm104_vm3, %v430_v23, 0.0 }
 0x38f   :  { %433 = vadd.xlane.f32.xlu1 %v432_v28 }
 0x390   :  { %v435_v29 = vsel %vm104_vm3, %v431_v27, 0.0 }
 0x391   :  { %436 = vadd.xlane.f32.xlu0 %v435_v29 }
 0x41c   :  { %v434_v30 = vpop.xlane.xlu1 %433 }
 0x41d   :  { %v439_v31 = vmul.f32 0.03125, %v434_v30 }
 0x41e   :  { %v437_v32 = vpop.xlane.xlu0 %436 }
 0x41f   :  { %v441_v26 = vsub.f32 %v430_v23, %v439_v31  ;;  %v440_v34 = vmul.f32 0.03125, %v437_v32 }
 0x421   :  { %v442_v35 = vsub.f32 %v431_v27, %v440_v34  ;;  %v443_v36 = vmul.f32 %v441_v26, %v441_v26 }
 0x423   :  { %v445_v33 = vsel %vm104_vm3, %v443_v36, 0.0  ;;  %v444_v37 = vmul.f32 %v442_v35, %v442_v35 }
 0x424   :  { %446 = vadd.xlane.f32.xlu0 %v445_v33 }
 0x425   :  { %v448_v38 = vsel %vm104_vm3, %v444_v37, 0.0 }
 0x426   :  { %449 = vadd.xlane.f32.xlu1 %v448_v38 }
 0x427   :  { %586 = shalt.err (!%p583_p4)
}
 0x428   :  { %s587_s21 = scalar_lea.hbm %s764_s3, 256 }
 0x429   :  { %p588_p5 = scmp.ne.s32.totalorder %s764_s3, %s587_s21  ;;  %p591_p6 = scmp.lt.u32.totalorder %s587_s21, %s764_s3 }
 0x42b   :  { %p593_p7 = pnand %p591_p6, %p588_p5 }
 0x42d   :  { %596 = shalt.err (!%p593_p7)
}
 0x42e   :  { %s627_s26 = smov 128   ;;  %s628_s27 = smov 8   ;;  %v461_v45 = vsub.s32 4, %v678_v16  ;;  %v467_v46 = vsub.s32 5, %v678_v16 }
 0x42f   :  { %496 = dma.vmem_to_hbm [thread:$0]  %s491_s17, 256, %s764_s3, [#allocation5], %s627_s26, %s627_s26, %s628_s27  }
 0x430   :  { %v462_v47 = vrot.slane %v685_v19, %v461_v45  ;;  %v468_v50 = vrot.slane %v685_v19, %v467_v46  ;;  %s629_s3 = smov [#allocation2]  }
 0x431   :  { %s478_s30 = sshll.u32 %s629_s3, 4  ;;  %s479_s30 = int_to_ptr.vmem [resolvable:$true] %s478_s30 }
 0x432   :  { %s597_s4 = scalar_lea.vmem %s479_s30, 256  ;;  %p602_p9 = scmp.lt.s32.totalorder %s479_s30, %s479_s30 }
 0x433   :  { %p598_p8 = scmp.ne.s32.totalorder %s479_s30, %s597_s4  ;;  %p603_p10 = scmp.lt.s32.totalorder %s597_s4, %s597_s4 }
 0x435   :  { %p604_p11 = por %p603_p10, %p602_p9 }
 0x437   :  { %p605_p12 = pnand %p604_p11, %p598_p8 }
 0x4b1   :  { %v447_v39 = vpop.xlane.xlu0 %446 }
 0x4b2   :  { %v451_v40 = vmul.f32 0.03125, %v447_v39 }
 0x4b3   :  { %v450_v41 = vpop.xlane.xlu1 %449 }
 0x4b4   :  { %v453_v42 = vadd.f32 1e-05, %v451_v40  ;;  %v452_v43 = vmul.f32 0.03125, %v450_v41 }
 0x4b6   :  { %571 = vrsqrt.f32 %v453_v42  ;;  %v454_v44 = vadd.f32 1e-05, %v452_v43 }
 0x4b8   :  { %573 = vrsqrt.f32 %v454_v44 }
 0x4c0   :  { %v572_v48 = vpop.eup %571 }
 0x4c1   :  { %v457_v49 = vmul.f32 %v572_v48, %v441_v26 }
 0x4c2   :  { %v574_v51 = vpop.eup %573 }
 0x4c3   :  { %v458_v52 = vmul.f32 %v574_v51, %v442_v35  ;;  %v463_v53 = vmul.f32 %v462_v47, %v457_v49 }
 0x4c5   :  { %v464_v54 = vmul.f32 %v462_v47, %v458_v52  ;;  %v469_v55 = vadd.f32 %v468_v50, %v463_v53 }
 0x4c7   :  { %v470_v56 = vadd.f32 %v468_v50, %v464_v54  ;;  %471 = vst.msk [vmem:[#allocation2] sm:$0xff] %vm104_vm3, %v469_v55 }
 0x4c9   :  { %472 = vst.msk [vmem:[#allocation2 + $0x8] sm:$0xff] %vm104_vm3, %v470_v56 }
 0x4ca   :  { %608 = shalt.err (!%p605_p12)
}
 0x4cb   :  { %s609_s7 = scalar_lea.hbm %s763_s2, 256 }
 0x4cc   :  { %p610_p13 = scmp.ne.s32.totalorder %s763_s2, %s609_s7  ;;  %p613_p0 = scmp.lt.u32.totalorder %s609_s7, %s763_s2 }
 0x4ce   :  { %p615_p1 = pnand %p613_p0, %p610_p13 }
 0x4d0   :  { %618 = shalt.err (!%p615_p1)
}
 0x4d1   :  { %484 = dma.vmem_to_hbm [thread:$0]  %s479_s30, 256, %s763_s2, [#allocation3], %s627_s26, %s627_s26, %s628_s27  }
 0x4d2   :  { %619 = dma.done.wait [#allocation3], 256  }
 0x4d3   :  { %620 = vsyncadd [#allocation3], 4294967040 }
 0x4d4   :  { %621 = dma.done.wait [#allocation5], 256  }
 0x4d5   :  { %622 = vsyncadd [#allocation5], 4294967040 }
 0x4d6   :  { %503 = vsyncpa [#allocation3], 1 }
 0x4d7   :  { %504 = vsyncpa [#allocation5], 1 }

</bundles_post_ra>
